<compile_context>
chip_gen: v7x
topology: tpu7x:2x2x1
jax: 0.10.0
libtpu: 0.0.40
codegen_flags: <defaults>
</compile_context>

<pallas_src>
import jax
import jax.numpy as jnp
from jax.experimental import pallas as pl
from jax.experimental.pallas import tpu as pltpu

Q = 37  # number of quantifiers (metabolites)


def _round_up(n, m):
    return ((n + m - 1) // m) * m


def quant_kernel(x_ref, w1_ref, b1_ref, w2_ref, b2_ref, out_ref):
    x = x_ref[...]                                                   # (B_pad, L)

    # Layer 1: one fused MXU matmul covering all quantifiers' hidden units.
    h = jnp.dot(x, w1_ref[...], preferred_element_type=jnp.float32)  # (B_pad, QH_pad)
    h = jnp.maximum(h + b1_ref[...], 0.0)

    # Layer 2: block-diagonal MXU matmul -> lane-dense (B_pad, QO_pad) tile.
    out = jnp.dot(h, w2_ref[...], preferred_element_type=jnp.float32) + b2_ref[...]

    # Single unmasked, lane-dense store of the whole result.
    out_ref[...] = out.astype(out_ref.dtype)


def quantification_wrapper(x, w1, b1, w2, b2):
    """x: (B, L);  w1: (Q, L, H);  b1: (Q, 1, H);  w2: (Q, 1, H);  b2: (Q,)."""
    B, L = x.shape
    Qn, _, H = w1.shape

    QH = Qn * H
    QH_pad = _round_up(QH, 128)   # 37*32 = 1184 -> 1280 (clean 128-lane groups)
    QO_pad = _round_up(Qn, 128)   # 37 -> 128 (lane-dense output store)
    B_pad = _round_up(B, 8)       # sublane alignment for the batch rows

    # ---- one-time weight packing (plain JAX, fused by XLA around the call) ----
    # W1: (Q, L, H) -> (L, Q*H), zero-pad the packed hidden lanes.
    w1_all = jnp.transpose(w1, (1, 0, 2)).reshape(L, QH)
    w1_all = jnp.pad(w1_all, ((0, 0), (0, QH_pad - QH)))
    # b1: (Q, 1, H) -> (1, Q*H), zero-pad.
    b1_all = jnp.pad(b1.reshape(1, QH), ((0, 0), (0, QH_pad - QH)))
    # W2 block-diagonal: [q*H + h, q] = w2[q, 0, h]; zeros elsewhere/in padding.
    rows = jnp.arange(QH)
    cols = jnp.repeat(jnp.arange(Qn), H)
    w2_blk = jnp.zeros((QH_pad, QO_pad), jnp.float32).at[rows, cols].set(
        w2.reshape(QH).astype(jnp.float32))
    # b2 as a lane-dense VMEM row (no SMEM scalar reads).
    b2_row = jnp.pad(b2.reshape(1, Qn), ((0, 0), (0, QO_pad - Qn)))
    # Pad batch rows (sliced off below; padded rows are irrelevant).
    x_pad = jnp.pad(x, ((0, B_pad - B), (0, 0)))

    out_pad = pl.pallas_call(
        quant_kernel,
        out_shape=jax.ShapeDtypeStruct((B_pad, QO_pad), jnp.float32),
        in_specs=[pl.BlockSpec(memory_space=pltpu.MemorySpace.VMEM)] * 5,
        out_specs=pl.BlockSpec(memory_space=pltpu.MemorySpace.VMEM),
    )(x_pad, w1_all, b1_all, w2_blk, b2_row)

    # Drop the lane/row padding -> (B, Q), matching torch.stack([...]).T.
    return out_pad[:B, :Qn]


def reference(x, w1, b1, w2, b2):
    # pure-JAX reference of the 37 quantifiers + stack().T
    h = jax.nn.relu(jnp.einsum("bl,qlh->qbh", x, w1) + b1)   # (Q, B, H)
    out = jnp.sum(h * w2, axis=-1) + b2[:, None]             # (Q, B)
    return out.T                                             # (B, Q)


if __name__ == "__main__":
    B, L, H = 8, 64, 32

    key = jax.random.PRNGKey(0)
    kx, k1, k2, k3, k4 = jax.random.split(key, 5)

    x = jax.random.normal(kx, (B, L), dtype=jnp.float32)
    w1 = jax.random.normal(k1, (Q, L, H), dtype=jnp.float32) * 0.1
    b1 = jax.random.normal(k2, (Q, 1, H), dtype=jnp.float32) * 0.1
    w2 = jax.random.normal(k3, (Q, 1, H), dtype=jnp.float32) * 0.1
    b2 = jax.random.normal(k4, (Q,), dtype=jnp.float32) * 0.1

    out = jax.jit(quantification_wrapper)(x, w1, b1, w2, b2)
    out = jax.block_until_ready(out)

    ref = reference(x, w1, b1, w2, b2)
    assert out.shape == (B, Q), out.shape
    assert jnp.allclose(out, ref, atol=1e-3, rtol=1e-3), "mismatch vs reference"

    print("KERNEL_OK")
</pallas_src>

<mosaic_0001>
module attributes {stable_mosaic.version = 11 : i64} {
  func.func @quant_kernel(%arg0: memref<8x64xf32, #tpu.memory_space<vmem>>, %arg1: memref<64x1280xf32, #tpu.memory_space<vmem>>, %arg2: memref<1x1280xf32, #tpu.memory_space<vmem>>, %arg3: memref<1280x128xf32, #tpu.memory_space<vmem>>, %arg4: memref<1x128xf32, #tpu.memory_space<vmem>>, %arg5: memref<8x128xf32, #tpu.memory_space<vmem>>) attributes {dimension_semantics = [], scalar_prefetch = 0 : i64, scratch_operands = 0 : i64, tpu.core_type = #tpu.core_type<tc>} {
    %c0 = arith.constant 0 : index
    %c0_0 = arith.constant 0 : index
    %0 = vector.load %arg0[%c0, %c0_0] : memref<8x64xf32, #tpu.memory_space<vmem>>, vector<8x64xf32>
    %c0_1 = arith.constant 0 : index
    %c0_2 = arith.constant 0 : index
    %1 = vector.load %arg1[%c0_1, %c0_2] : memref<64x1280xf32, #tpu.memory_space<vmem>>, vector<64x1280xf32>
    %cst = arith.constant dense<0.000000e+00> : vector<8x1280xf32>
    %2 = tpu.matmul %0, %1, %cst {dimension_numbers = #tpu.dot_dimension_numbers<[1], [0], [0], [1], [0, 0, 1, 1], [], []>} : vector<8x64xf32>, vector<64x1280xf32>, vector<8x1280xf32> -> vector<8x1280xf32>
    %c0_3 = arith.constant 0 : index
    %c0_4 = arith.constant 0 : index
    %3 = vector.load %arg2[%c0_3, %c0_4] : memref<1x1280xf32, #tpu.memory_space<vmem>>, vector<1x1280xf32>
    %4 = vector.broadcast %3 : vector<1x1280xf32> to vector<8x1280xf32>
    %5 = arith.addf %2, %4 : vector<8x1280xf32>
    %cst_5 = arith.constant 0.000000e+00 : f32
    %6 = vector.broadcast %cst_5 : f32 to vector<8x1280xf32>
    %7 = arith.maximumf %5, %6 : vector<8x1280xf32>
    %c0_6 = arith.constant 0 : index
    %c0_7 = arith.constant 0 : index
    %8 = vector.load %arg3[%c0_6, %c0_7] : memref<1280x128xf32, #tpu.memory_space<vmem>>, vector<1280x128xf32>
    %cst_8 = arith.constant dense<0.000000e+00> : vector<8x128xf32>
    %9 = tpu.matmul %7, %8, %cst_8 {dimension_numbers = #tpu.dot_dimension_numbers<[1], [0], [0], [1], [0, 0, 1, 1], [], []>} : vector<8x1280xf32>, vector<1280x128xf32>, vector<8x128xf32> -> vector<8x128xf32>
    %c0_9 = arith.constant 0 : index
    %c0_10 = arith.constant 0 : index
    %10 = vector.load %arg4[%c0_9, %c0_10] : memref<1x128xf32, #tpu.memory_space<vmem>>, vector<1x128xf32>
    %11 = vector.broadcast %10 : vector<1x128xf32> to vector<8x128xf32>
    %12 = arith.addf %9, %11 : vector<8x128xf32>
    %c0_11 = arith.constant 0 : index
    %c0_12 = arith.constant 0 : index
    %13 = vector.load %arg5[%c0_11, %c0_12] : memref<8x128xf32, #tpu.memory_space<vmem>>, vector<8x128xf32>
    tpu.vector_store %arg5[%c0_11, %c0_12], %12 {strides = array<i32>} : memref<8x128xf32, #tpu.memory_space<vmem>>, vector<8x128xf32>,
    return
  }
}

</mosaic_0001>

<bundles_post_ra>
// kernel: quantification_wrapper.1
= control target key start
LH: loop header
LB: loop body
LE: loop exit
PB: predicated region body
PF: predicated region fallthrough
CT: control target
= control target key end

     0   :  { %v1504_v7 = vmov 0.0   ;;  %vm156_vm0 = vcmask 523264   ;;  %s2334_s0 = inlined_call_operand.vmem [shape: f32[8,64], index: 0, kind: input, shape index: {}]   ;;  %s2335_s1 = inlined_call_operand.vmem [shape: f32[64,1280], index: 1, kind: input, shape index: {}]   ;;  %s2336_s2 = inlined_call_operand.vmem [shape: f32[1,1280], index: 2, kind: input, shape index: {}]   ;;  %s2337_s3 = inlined_call_operand.vmem [shape: f32[1280,128], index: 3, kind: input, shape index: {}]   ;;  %s2338_s4 = inlined_call_operand.vmem [shape: f32[1,128], index: 4, kind: input, shape index: {}]   ;;  %s2339_s5 = inlined_call_operand.hbm [shape: f32[8,128], index: 5, kind: output, shape index: {}]  }
   0x1   :  { %v23_v0 = vld [vmem:[%s2335_s1 + $0x8] sm:$0xff]  ;;  %v33_v1 = vld [vmem:[%s2335_s1 + $0x58] sm:$0xff]  ;;  %v22_v2 = vld [vmem:[%s2335_s1] sm:$0xff]  ;;  %224 = vmatprep.mubr.f32.mxu0 %v1504_v7  ;;  %295 = vmatprep.mubr.f32.mxu1 %v1504_v7 }
   0x2   :  { %v1238_v3 = vpack.c.bf16 %v33_v1, %v23_v0  ;;  %v32_v4 = vld [vmem:[%s2335_s1 + $0x50] sm:$0xff]  ;;  %v25_v5 = vld [vmem:[%s2335_s1 + $0x18] sm:$0xff]  ;;  %v35_v6 = vld [vmem:[%s2335_s1 + $0x68] sm:$0xff] }
   0x3   :  { %v1240_v8 = vpack.c.bf16 %v32_v4, %v22_v2  ;;  %v1254_v9 = vpack.c.bf16 %v35_v6, %v25_v5  ;;  %v24_v10 = vld [vmem:[%s2335_s1 + $0x10] sm:$0xff]  ;;  %v34_v11 = vld [vmem:[%s2335_s1 + $0x60] sm:$0xff]  ;;  %v43_v12 = vld [vmem:[%s2335_s1 + $0xa8] sm:$0xff] }
   0x4   :  { %1239 = vmatprep.subr.bf16.mxu0 %v1238_v3  ;;  %v1256_v13 = vpack.c.bf16 %v34_v11, %v24_v10  ;;  %v53_v14 = vld [vmem:[%s2335_s1 + $0xf8] sm:$0xff]  ;;  %v42_v15 = vld [vmem:[%s2335_s1 + $0xa0] sm:$0xff]  ;;  %v52_v16 = vld [vmem:[%s2335_s1 + $0xf0] sm:$0xff] }
   0x5   :  { %1241 = vmatpush1.bf16.msra.mxu0 %v1240_v8  ;;  %1255 = vmatprep.subr.bf16.mxu1 %v1254_v9  ;;  %v1242_v17 = vpack.c.bf16 %v53_v14, %v43_v12  ;;  %v1244_v18 = vpack.c.bf16 %v52_v16, %v42_v15  ;;  %v45_v19 = vld [vmem:[%s2335_s1 + $0xb8] sm:$0xff]  ;;  %v55_v20 = vld [vmem:[%s2335_s1 + $0x108] sm:$0xff]  ;;  %v44_v21 = vld [vmem:[%s2335_s1 + $0xb0] sm:$0xff] }
   0x6   :  { %1257 = vmatpush1.bf16.msra.mxu1 %v1256_v13  ;;  %v1258_v22 = vpack.c.bf16 %v55_v20, %v45_v19  ;;  %v54_v23 = vld [vmem:[%s2335_s1 + $0x100] sm:$0xff]  ;;  %v63_v24 = vld [vmem:[%s2335_s1 + $0x148] sm:$0xff]  ;;  %v73_v25 = vld [vmem:[%s2335_s1 + $0x198] sm:$0xff] }
   0x7   :  { %1243 = vmatprep.subr.bf16.mxu0 %v1242_v17  ;;  %v1260_v26 = vpack.c.bf16 %v54_v23, %v44_v21  ;;  %v1246_v27 = vpack.c.bf16 %v73_v25, %v63_v24  ;;  %v62_v28 = vld [vmem:[%s2335_s1 + $0x140] sm:$0xff]  ;;  %v72_v29 = vld [vmem:[%s2335_s1 + $0x190] sm:$0xff]  ;;  %v65_v30 = vld [vmem:[%s2335_s1 + $0x158] sm:$0xff] }
   0x8   :  { %1259 = vmatprep.subr.bf16.mxu1 %v1258_v22  ;;  %v75_v31 = vld [vmem:[%s2335_s1 + $0x1a8] sm:$0xff]  ;;  %v64_v32 = vld [vmem:[%s2335_s1 + $0x150] sm:$0xff]  ;;  %v74_v33 = vld [vmem:[%s2335_s1 + $0x1a0] sm:$0xff]  ;;  %v1248_v34 = vpack.c.bf16 %v72_v29, %v62_v28 }
   0x9   :  { %1245 = vmatpush1.bf16.msra.mxu0 %v1244_v18  ;;  %v1262_v35 = vpack.c.bf16 %v75_v31, %v65_v30  ;;  %v83_v36 = vld [vmem:[%s2335_s1 + $0x1e8] sm:$0xff]  ;;  %v93_v37 = vld [vmem:[%s2335_s1 + $0x238] sm:$0xff]  ;;  %v82_v38 = vld [vmem:[%s2335_s1 + $0x1e0] sm:$0xff]  ;;  %v1264_v39 = vpack.c.bf16 %v74_v33, %v64_v32 }
   0xa   :  { %1261 = vmatpush1.bf16.msra.mxu1 %v1260_v26  ;;  %1247 = vmatprep.subr.bf16.mxu0 %v1246_v27  ;;  %v1250_v40 = vpack.c.bf16 %v93_v37, %v83_v36  ;;  %v92_v41 = vld [vmem:[%s2335_s1 + $0x230] sm:$0xff]  ;;  %v85_v42 = vld [vmem:[%s2335_s1 + $0x1f8] sm:$0xff]  ;;  %v95_v43 = vld [vmem:[%s2335_s1 + $0x248] sm:$0xff] }
   0xb   :  { %1263 = vmatprep.subr.bf16.mxu1 %v1262_v35  ;;  %v1266_v44 = vpack.c.bf16 %v95_v43, %v85_v42  ;;  %v84_v45 = vld [vmem:[%s2335_s1 + $0x1f0] sm:$0xff]  ;;  %v94_v46 = vld [vmem:[%s2335_s1 + $0x240] sm:$0xff]  ;;  %v27_v47 = vld [vmem:[%s2335_s1 + $0x28] sm:$0xff]  ;;  %v1252_v49 = vpack.c.bf16 %v92_v41, %v82_v38 }
   0xc   :  { %v37_v48 = vld [vmem:[%s2335_s1 + $0x78] sm:$0xff]  ;;  %v39_v51 = vld [vmem:[%s2335_s1 + $0x88] sm:$0xff]  ;;  %v1268_v52 = vpack.c.bf16 %v94_v46, %v84_v45  ;;  %v26_v54 = vld [vmem:[%s2335_s1 + $0x20] sm:$0xff] }
   0xd   :  { %1249 = vmatpush1.bf16.msra.mxu0 %v1248_v34  ;;  %v29_v50 = vld [vmem:[%s2335_s1 + $0x38] sm:$0xff]  ;;  %v1270_v53 = vpack.c.bf16 %v37_v48, %v27_v47  ;;  %v36_v55 = vld [vmem:[%s2335_s1 + $0x70] sm:$0xff]  ;;  %v38_v58 = vld [vmem:[%s2335_s1 + $0x80] sm:$0xff] }
   0xe   :  { %1265 = vmatpush1.bf16.msra.mxu1 %v1264_v39  ;;  %1251 = vmatprep.subr.bf16.mxu0 %v1250_v40  ;;  %v28_v56 = vld [vmem:[%s2335_s1 + $0x30] sm:$0xff]  ;;  %v1286_v57 = vpack.c.bf16 %v39_v51, %v29_v50  ;;  %v47_v59 = vld [vmem:[%s2335_s1 + $0xc8] sm:$0xff]  ;;  %v57_v60 = vld [vmem:[%s2335_s1 + $0x118] sm:$0xff]  ;;  %v1272_v0 = vpack.c.bf16 %v36_v55, %v26_v54 }
   0xf   :  { %1267 = vmatprep.subr.bf16.mxu1 %v1266_v44  ;;  %v49_v61 = vld [vmem:[%s2335_s1 + $0xd8] sm:$0xff]  ;;  %v59_v62 = vld [vmem:[%s2335_s1 + $0x128] sm:$0xff]  ;;  %v1673_v63 = vld [vmem:[%s2334_s0] sm:$0xff]  ;;  %v1288_v1 = vpack.c.bf16 %v38_v58, %v28_v56  ;;  %v1274_v2 = vpack.c.bf16 %v57_v60, %v47_v59 }
  0x10   :  { %v46_v3 = vld [vmem:[%s2335_s1 + $0xc0] sm:$0xff]  ;;  %v56_v4 = vld [vmem:[%s2335_s1 + $0x110] sm:$0xff]  ;;  %v1290_v6 = vpack.c.bf16 %v59_v62, %v49_v61  ;;  %v67_v9 = vld [vmem:[%s2335_s1 + $0x168] sm:$0xff] }
  0x11   :  { %1253 = vmatpush1.bf16.msra.mxu0 %v1252_v49  ;;  %v48_v5 = vld [vmem:[%s2335_s1 + $0xd0] sm:$0xff]  ;;  %v58_v8 = vld [vmem:[%s2335_s1 + $0x120] sm:$0xff]  ;;  %v77_v10 = vld [vmem:[%s2335_s1 + $0x1b8] sm:$0xff]  ;;  %v1276_v13 = vpack.c.bf16 %v56_v4, %v46_v3 }
  0x12   :  { %1269 = vmatpush1.bf16.msra.mxu1 %v1268_v52  ;;  %1271 = vmatprep.subr.bf16.mxu0 %v1270_v53  ;;  %v69_v11 = vld [vmem:[%s2335_s1 + $0x178] sm:$0xff]  ;;  %v79_v12 = vld [vmem:[%s2335_s1 + $0x1c8] sm:$0xff]  ;;  %v1292_v14 = vpack.c.bf16 %v58_v8, %v48_v5  ;;  %v1278_v15 = vpack.c.bf16 %v77_v10, %v67_v9  ;;  %v66_v16 = vld [vmem:[%s2335_s1 + $0x160] sm:$0xff] }
  0x13   :  { %1287 = vmatprep.subr.bf16.mxu1 %v1286_v57  ;;  %v76_v17 = vld [vmem:[%s2335_s1 + $0x1b0] sm:$0xff]  ;;  %v1294_v19 = vpack.c.bf16 %v79_v12, %v69_v11  ;;  %v78_v20 = vld [vmem:[%s2335_s1 + $0x1c0] sm:$0xff]  ;;  %v87_v21 = vld [vmem:[%s2335_s1 + $0x208] sm:$0xff] }
  0x14   :  { %1057 = vmatmul.mubr.msk.f32.vlgmr.msra.gmra.mrb[0].mxu0 %vm156_vm0, %v1673_v63  ;;  %v68_v18 = vld [vmem:[%s2335_s1 + $0x170] sm:$0xff]  ;;  %v97_v22 = vld [vmem:[%s2335_s1 + $0x258] sm:$0xff]  ;;  %v99_v24 = vld [vmem:[%s2335_s1 + $0x268] sm:$0xff]  ;;  %v1280_v25 = vpack.c.bf16 %v76_v17, %v66_v16 }
  0x15   :  { %1058 = vmatmul.mubr.msk.f32.vlgmr.msra.gmra.mrb[0].mxu1 %vm156_vm0, %v1673_v63  ;;  %1273 = vmatpush1.bf16.msra.mxu0 %v1272_v0  ;;  %v89_v23 = vld [vmem:[%s2335_s1 + $0x218] sm:$0xff]  ;;  %v1296_v26 = vpack.c.bf16 %v78_v20, %v68_v18  ;;  %v1282_v27 = vpack.c.bf16 %v97_v22, %v87_v21  ;;  %v86_v28 = vld [vmem:[%s2335_s1 + $0x200] sm:$0xff]  ;;  %v96_v29 = vld [vmem:[%s2335_s1 + $0x250] sm:$0xff] }
  0x16   :  { %1289 = vmatpush1.bf16.msra.mxu1 %v1288_v1  ;;  %1275 = vmatprep.subr.bf16.mxu0 %v1274_v2  ;;  %v88_v30 = vld [vmem:[%s2335_s1 + $0x210] sm:$0xff]  ;;  %v1298_v31 = vpack.c.bf16 %v99_v24, %v89_v23  ;;  %v98_v32 = vld [vmem:[%s2335_s1 + $0x260] sm:$0xff]  ;;  %v31_v33 = vld [vmem:[%s2335_s1 + $0x48] sm:$0xff]  ;;  %v1284_v37 = vpack.c.bf16 %v96_v29, %v86_v28 }
  0x17   :  { %1291 = vmatprep.subr.bf16.mxu1 %v1290_v6  ;;  %366 = vmatprep.mubr.f32.mxu0 %v1504_v7  ;;  %v41_v34 = vld [vmem:[%s2335_s1 + $0x98] sm:$0xff]  ;;  %v541_v35 = vld [vmem:[%s2337_s3 + $0x80] sm:$0xff]  ;;  %v542_v36 = vld [vmem:[%s2337_s3 + $0x88] sm:$0xff]  ;;  %v1300_v38 = vpack.c.bf16 %v98_v32, %v88_v30 }
  0x18   :  { %437 = vmatprep.mubr.f32.mxu1 %v1504_v7  ;;  %v1302_v39 = vpack.c.bf16 %v41_v34, %v31_v33  ;;  %v30_v40 = vld [vmem:[%s2335_s1 + $0x40] sm:$0xff]  ;;  %v40_v41 = vld [vmem:[%s2335_s1 + $0x90] sm:$0xff]  ;;  %v51_v42 = vld [vmem:[%s2335_s1 + $0xe8] sm:$0xff]  ;;  %v1318_v44 = vpack.c.bf16 %v542_v36, %v541_v35 }
  0x19   :  { %1277 = vmatpush1.bf16.msra.mxu0 %v1276_v13  ;;  %v61_v43 = vld [vmem:[%s2335_s1 + $0x138] sm:$0xff]  ;;  %v525_v45 = vld [vmem:[%s2337_s3] sm:$0xff]  ;;  %v526_v46 = vld [vmem:[%s2337_s3 + $0x8] sm:$0xff]  ;;  %v1304_v47 = vpack.c.bf16 %v40_v41, %v30_v40 }
  0x1a   :  { %1293 = vmatpush1.bf16.msra.mxu1 %v1292_v14  ;;  %1279 = vmatprep.subr.bf16.mxu0 %v1278_v15  ;;  %v543_v48 = vld [vmem:[%s2337_s3 + $0x90] sm:$0xff]  ;;  %v544_v49 = vld [vmem:[%s2337_s3 + $0x98] sm:$0xff]  ;;  %v1306_v50 = vpack.c.bf16 %v61_v43, %v51_v42  ;;  %v50_v51 = vld [vmem:[%s2335_s1 + $0xe0] sm:$0xff]  ;;  %v1320_v55 = vpack.c.bf16 %v526_v46, %v525_v45 }
  0x1b   :  { %1295 = vmatprep.subr.bf16.mxu1 %v1294_v19  ;;  %v60_v52 = vld [vmem:[%s2335_s1 + $0x130] sm:$0xff]  ;;  %v71_v53 = vld [vmem:[%s2335_s1 + $0x188] sm:$0xff]  ;;  %v81_v54 = vld [vmem:[%s2335_s1 + $0x1d8] sm:$0xff]  ;;  %v1322_v56 = vpack.c.bf16 %v544_v49, %v543_v48 }
  0x1c   :  { %v527_v57 = vld [vmem:[%s2337_s3 + $0x10] sm:$0xff]  ;;  %v528_v58 = vld [vmem:[%s2337_s3 + $0x18] sm:$0xff]  ;;  %v1308_v59 = vpack.c.bf16 %v60_v52, %v50_v51  ;;  %v545_v60 = vld [vmem:[%s2337_s3 + $0xa0] sm:$0xff]  ;;  %v1310_v62 = vpack.c.bf16 %v81_v54, %v71_v53 }
  0x1d   :  { %1281 = vmatpush1.bf16.msra.mxu0 %v1280_v25  ;;  %v546_v61 = vld [vmem:[%s2337_s3 + $0xa8] sm:$0xff]  ;;  %v70_v0 = vld [vmem:[%s2335_s1 + $0x180] sm:$0xff]  ;;  %v80_v1 = vld [vmem:[%s2335_s1 + $0x1d0] sm:$0xff]  ;;  %v1324_v4 = vpack.c.bf16 %v528_v58, %v527_v57 }
  0x1e   :  { %1297 = vmatpush1.bf16.msra.mxu1 %v1296_v26  ;;  %1283 = vmatprep.subr.bf16.mxu0 %v1282_v27  ;;  %v91_v2 = vld [vmem:[%s2335_s1 + $0x228] sm:$0xff]  ;;  %v101_v3 = vld [vmem:[%s2335_s1 + $0x278] sm:$0xff]  ;;  %v1326_v5 = vpack.c.bf16 %v546_v61, %v545_v60  ;;  %v529_v6 = vld [vmem:[%s2337_s3 + $0x20] sm:$0xff]  ;;  %v1312_v8 = vpack.c.bf16 %v80_v1, %v70_v0 }
  0x1f   :  { %1299 = vmatprep.subr.bf16.mxu1 %v1298_v31  ;;  %v547_v9 = vld [vmem:[%s2337_s3 + $0xb0] sm:$0xff]  ;;  %v548_v10 = vld [vmem:[%s2337_s3 + $0xb8] sm:$0xff]  ;;  %v1314_v11 = vpack.c.bf16 %v101_v3, %v91_v2  ;;  %v90_v12 = vld [vmem:[%s2335_s1 + $0x220] sm:$0xff] }
  0x20   :  { %v100_v13 = vld [vmem:[%s2335_s1 + $0x270] sm:$0xff]  ;;  %v573_v14 = vld [vmem:[%s2337_s3 + $0x180] sm:$0xff]  ;;  %v574_v15 = vld [vmem:[%s2337_s3 + $0x188] sm:$0xff]  ;;  %v1330_v17 = vpack.c.bf16 %v548_v10, %v547_v9 }
  0x21   :  { %1285 = vmatpush1.bf16.msra.mxu0 %v1284_v37  ;;  %v531_v18 = vld [vmem:[%s2337_s3 + $0x30] sm:$0xff]  ;;  %v532_v19 = vld [vmem:[%s2337_s3 + $0x38] sm:$0xff]  ;;  %v1316_v20 = vpack.c.bf16 %v100_v13, %v90_v12  ;;  %v549_v21 = vld [vmem:[%s2337_s3 + $0xc0] sm:$0xff] }
  0x22   :  { %1301 = vmatpush1.bf16.msra.mxu1 %v1300_v38  ;;  %1303 = vmatprep.subr.bf16.mxu0 %v1302_v39  ;;  %v550_v22 = vld [vmem:[%s2337_s3 + $0xc8] sm:$0xff] }
  0x23   :  { %1319 = vmatprep.subr.bf16.mxu1 %v1318_v44 }
  0x24   :  { %1059 = vmatmul.mubr.msk.f32.vlgmr.msra.gmra.mrb[2].mxu0 %vm156_vm0, %v1673_v63 }
  0x25   :  { %1060 = vmatmul.mubr.msk.f32.vlgmr.msra.gmra.mrb[2].mxu1 %vm156_vm0, %v1673_v63  ;;  %1305 = vmatpush1.bf16.msra.mxu0 %v1304_v47 }
  0x26   :  { %1307 = vmatprep.subr.bf16.mxu0 %v1306_v50  ;;  %508 = vmatprep.mubr.f32.mxu0 %v1504_v7  ;;  %v530_v7 = vld [vmem:[%s2337_s3 + $0x28] sm:$0xff] }
  0x27   :  { %1321 = vmatpush3.bf16.msra.mxu1 %v1320_v55  ;;  %v1328_v16 = vpack.c.bf16 %v530_v7, %v529_v6 }
  0x28   :  { %1323 = vmatprep.subr.bf16.mxu1 %v1322_v56 }
  0x29   :  { %1309 = vmatpush1.bf16.msra.mxu0 %v1308_v59 }
  0x2a   :  { %1311 = vmatprep.subr.bf16.mxu0 %v1310_v62 }
  0x2b   :  { %1325 = vmatpush3.bf16.msra.mxu1 %v1324_v4 }
  0x2c   :  { %1327 = vmatprep.subr.bf16.mxu1 %v1326_v5 }
  0x2d   :  { %1313 = vmatpush1.bf16.msra.mxu0 %v1312_v8 }
  0x2e   :  { %10 = vsyncpa [#allocation3], 0  ;;  %1315 = vmatprep.subr.bf16.mxu0 %v1314_v11  ;;  %v1350_v23 = vpack.c.bf16 %v574_v15, %v573_v14  ;;  %v557_v24 = vld [vmem:[%s2337_s3 + $0x100] sm:$0xff]  ;;  %v558_v25 = vld [vmem:[%s2337_s3 + $0x108] sm:$0xff]  ;;  %v1332_v28 = vpack.c.bf16 %v532_v19, %v531_v18  ;;  %v1334_v29 = vpack.c.bf16 %v550_v22, %v549_v21 }
  0x2f   :  { %v575_v26 = vld [vmem:[%s2337_s3 + $0x190] sm:$0xff]  ;;  %v576_v27 = vld [vmem:[%s2337_s3 + $0x198] sm:$0xff]  ;;  %1329 = vmatpush3.bf16.msra.mxu1 %v1328_v16  ;;  %v533_v30 = vld [vmem:[%s2337_s3 + $0x40] sm:$0xff]  ;;  %v1352_v32 = vpack.c.bf16 %v558_v25, %v557_v24 }
  0x30   :  { %1331 = vmatprep.subr.bf16.mxu1 %v1330_v17  ;;  %v534_v31 = vld [vmem:[%s2337_s3 + $0x48] sm:$0xff]  ;;  %v551_v33 = vld [vmem:[%s2337_s3 + $0xd0] sm:$0xff]  ;;  %v552_v34 = vld [vmem:[%s2337_s3 + $0xd8] sm:$0xff]  ;;  %v1354_v35 = vpack.c.bf16 %v576_v27, %v575_v26 }
  0x31   :  { %1317 = vmatpush1.bf16.msra.mxu0 %v1316_v20  ;;  %v559_v36 = vld [vmem:[%s2337_s3 + $0x110] sm:$0xff]  ;;  %v560_v37 = vld [vmem:[%s2337_s3 + $0x118] sm:$0xff]  ;;  %v577_v38 = vld [vmem:[%s2337_s3 + $0x1a0] sm:$0xff]  ;;  %v1336_v40 = vpack.c.bf16 %v534_v31, %v533_v30  ;;  %v1338_v41 = vpack.c.bf16 %v552_v34, %v551_v33  ;;  %v106_v34 = vlaneseq }
  0x32   :  { %1351 = vmatprep.subr.bf16.mxu0 %v1350_v23  ;;  %v578_v39 = vld [vmem:[%s2337_s3 + $0x1a8] sm:$0xff]  ;;  %v535_v42 = vld [vmem:[%s2337_s3 + $0x50] sm:$0xff]  ;;  %v536_v43 = vld [vmem:[%s2337_s3 + $0x58] sm:$0xff]  ;;  %v1356_v44 = vpack.c.bf16 %v560_v37, %v559_v36 }
  0x33   :  { %1333 = vmatpush3.bf16.msra.mxu1 %v1332_v28  ;;  %v553_v45 = vld [vmem:[%s2337_s3 + $0xe0] sm:$0xff]  ;;  %v1358_v46 = vpack.c.bf16 %v578_v39, %v577_v38  ;;  %v562_v48 = vld [vmem:[%s2337_s3 + $0x128] sm:$0xff]  ;;  %v579_v49 = vld [vmem:[%s2337_s3 + $0x1b0] sm:$0xff]  ;;  %v1340_v51 = vpack.c.bf16 %v536_v43, %v535_v42 }
  0x34   :  { %1061 = vmatmul.mubr.msk.f32.vlgmr.msra.gmra.mrb[4].mxu0 %vm156_vm0, %v1673_v63  ;;  %1335 = vmatprep.subr.bf16.mxu1 %v1334_v29  ;;  %v554_v63 = vld [vmem:[%s2337_s3 + $0xe8] sm:$0xff]  ;;  %v561_v47 = vld [vmem:[%s2337_s3 + $0x120] sm:$0xff]  ;;  %v580_v50 = vld [vmem:[%s2337_s3 + $0x1b8] sm:$0xff] }
  0x35   :  { %1353 = vmatpush3.bf16.msra.mxu0 %v1352_v32  ;;  %v1342_v52 = vpack.c.bf16 %v554_v63, %v553_v45  ;;  %v537_v53 = vld [vmem:[%s2337_s3 + $0x60] sm:$0xff]  ;;  %v538_v54 = vld [vmem:[%s2337_s3 + $0x68] sm:$0xff]  ;;  %v1360_v55 = vpack.c.bf16 %v562_v48, %v561_v47  ;;  %v1362_v56 = vpack.c.bf16 %v580_v50, %v579_v49  ;;  %v563_v57 = vld [vmem:[%s2337_s3 + $0x130] sm:$0xff] }
  0x36   :  { %1355 = vmatprep.subr.bf16.mxu0 %v1354_v35  ;;  %v564_v58 = vld [vmem:[%s2337_s3 + $0x138] sm:$0xff]  ;;  %v581_v59 = vld [vmem:[%s2337_s3 + $0x1c0] sm:$0xff]  ;;  %v582_v60 = vld [vmem:[%s2337_s3 + $0x1c8] sm:$0xff]  ;;  %v1344_v61 = vpack.c.bf16 %v538_v54, %v537_v53  ;;  %v2000_v35 = vshrl.u32 %v106_v34, 7 }
  0x37   :  { %1337 = vmatpush3.bf16.msra.mxu1 %v1336_v40  ;;  %v1364_v62 = vpack.c.bf16 %v564_v58, %v563_v57  ;;  %v1366_v0 = vpack.c.bf16 %v582_v60, %v581_v59  ;;  %v565_v1 = vld [vmem:[%s2337_s3 + $0x140] sm:$0xff]  ;;  %v566_v2 = vld [vmem:[%s2337_s3 + $0x148] sm:$0xff]  ;;  %v583_v3 = vld [vmem:[%s2337_s3 + $0x1d0] sm:$0xff] }
  0x38   :  { %1339 = vmatprep.subr.bf16.mxu1 %v1338_v41  ;;  %v584_v4 = vld [vmem:[%s2337_s3 + $0x1d8] sm:$0xff]  ;;  %v1368_v5 = vpack.c.bf16 %v566_v2, %v565_v1  ;;  %v567_v7 = vld [vmem:[%s2337_s3 + $0x150] sm:$0xff]  ;;  %v585_v10 = vld [vmem:[%s2337_s3 + $0x1e0] sm:$0xff]  ;;  %v108_v36 = vsub.s32 0, %v2000_v35  ;;  %v112_v38 = vsub.s32 1, %v2000_v35  ;;  %v116_v39 = vsub.s32 2, %v2000_v35 }
  0x39   :  { %1357 = vmatpush3.bf16.msra.mxu0 %v1356_v44  ;;  %v1370_v6 = vpack.c.bf16 %v584_v4, %v583_v3  ;;  %v568_v8 = vld [vmem:[%s2337_s3 + $0x158] sm:$0xff]  ;;  %v586_v11 = vld [vmem:[%s2337_s3 + $0x1e8] sm:$0xff]  ;;  %v569_v13 = vld [vmem:[%s2337_s3 + $0x160] sm:$0xff]  ;;  %v120_v40 = vsub.s32 3, %v2000_v35 }
  0x3a   :  { %1359 = vmatprep.subr.bf16.mxu0 %v1358_v46  ;;  %v1372_v9 = vpack.c.bf16 %v568_v8, %v567_v7  ;;  %v1374_v12 = vpack.c.bf16 %v586_v11, %v585_v10  ;;  %v570_v14 = vld [vmem:[%s2337_s3 + $0x168] sm:$0xff]  ;;  %v555_v16 = vld [vmem:[%s2337_s3 + $0xf0] sm:$0xff]  ;;  %v556_v17 = vld [vmem:[%s2337_s3 + $0xf8] sm:$0xff] }
  0x3b   :  { %1341 = vmatpush3.bf16.msra.mxu1 %v1340_v51  ;;  %v1376_v15 = vpack.c.bf16 %v570_v14, %v569_v13  ;;  %v1346_v18 = vpack.c.bf16 %v556_v17, %v555_v16  ;;  %v539_v19 = vld [vmem:[%s2337_s3 + $0x70] sm:$0xff]  ;;  %v540_v20 = vld [vmem:[%s2337_s3 + $0x78] sm:$0xff]  ;;  %v605_v28 = vld [vmem:[%s2337_s3 + $0x280] sm:$0xff] }
  0x3c   :  { %1343 = vmatprep.subr.bf16.mxu1 %v1342_v52  ;;  %v1348_v21 = vpack.c.bf16 %v540_v20, %v539_v19  ;;  %v587_v22 = vld [vmem:[%s2337_s3 + $0x1f0] sm:$0xff]  ;;  %v588_v23 = vld [vmem:[%s2337_s3 + $0x1f8] sm:$0xff]  ;;  %v606_v29 = vld [vmem:[%s2337_s3 + $0x288] sm:$0xff] }
  0x3d   :  { %1361 = vmatpush3.bf16.msra.mxu0 %v1360_v55  ;;  %v1378_v24 = vpack.c.bf16 %v588_v23, %v587_v22  ;;  %v571_v25 = vld [vmem:[%s2337_s3 + $0x170] sm:$0xff]  ;;  %v572_v26 = vld [vmem:[%s2337_s3 + $0x178] sm:$0xff]  ;;  %v1382_v30 = vpack.c.bf16 %v606_v29, %v605_v28  ;;  %v637_v31 = vld [vmem:[%s2337_s3 + $0x380] sm:$0xff]  ;;  %v128_v23 = vsub.s32 5, %v2000_v35 }
  0x3e   :  { %1363 = vmatprep.subr.bf16.mxu0 %v1362_v56  ;;  %v1380_v27 = vpack.c.bf16 %v572_v26, %v571_v25  ;;  %v638_v32 = vld [vmem:[%s2337_s3 + $0x388] sm:$0xff]  ;;  %v2006_v37 = vld [vmem:[%s2336_s2] sm:$0xff]  ;;  %v607_v55 = vld [vmem:[%s2337_s3 + $0x290] sm:$0xff]  ;;  %v136_v26 = vsub.s32 7, %v2000_v35 }
  0x3f   :  { %1345 = vmatpush3.bf16.msra.mxu1 %v1344_v61  ;;  %v1414_v33 = vpack.c.bf16 %v638_v32, %v637_v31  ;;  %v109_v41 = vrot.slane %v2006_v37, %v108_v36  ;;  %v113_v42 = vrot.slane %v2006_v37, %v112_v38  ;;  %v117_v43 = vrot.slane %v2006_v37, %v116_v39  ;;  %v589_v48 = vld [vmem:[%s2337_s3 + $0x200] sm:$0xff]  ;;  %v590_v49 = vld [vmem:[%s2337_s3 + $0x208] sm:$0xff]  ;;  %v608_v56 = vld [vmem:[%s2337_s3 + $0x298] sm:$0xff] }
  0x40   :  { %1347 = vmatprep.subr.bf16.mxu1 %v1346_v18  ;;  %v121_v44 = vrot.slane %v2006_v37, %v120_v40  ;;  %v621_v50 = vld [vmem:[%s2337_s3 + $0x300] sm:$0xff]  ;;  %v622_v54 = vld [vmem:[%s2337_s3 + $0x308] sm:$0xff]  ;;  %v639_v58 = vld [vmem:[%s2337_s3 + $0x390] sm:$0xff]  ;;  %v1386_v3 = vpack.c.bf16 %v608_v56, %v607_v55 }
  0x41   :  { %1365 = vmatpush3.bf16.msra.mxu0 %v1364_v62  ;;  %v640_v59 = vld [vmem:[%s2337_s3 + $0x398] sm:$0xff]  ;;  %v1384_v62 = vpack.c.bf16 %v590_v49, %v589_v48  ;;  %v1416_v2 = vpack.c.bf16 %v622_v54, %v621_v50  ;;  %v591_v4 = vld [vmem:[%s2337_s3 + $0x210] sm:$0xff]  ;;  %v610_v10 = vld [vmem:[%s2337_s3 + $0x2a8] sm:$0xff] }
  0x42   :  { %1367 = vmatprep.subr.bf16.mxu0 %v1366_v0  ;;  %v1418_v7 = vpack.c.bf16 %v640_v59, %v639_v58  ;;  %v624_v8 = vld [vmem:[%s2337_s3 + $0x318] sm:$0xff]  ;;  %v641_v11 = vld [vmem:[%s2337_s3 + $0x3a0] sm:$0xff]  ;;  %v594_v17 = vld [vmem:[%s2337_s3 + $0x228] sm:$0xff] }
  0x43   :  { %1349 = vmatpush3.bf16.msra.mxu1 %v1348_v21  ;;  %v593_v16 = vld [vmem:[%s2337_s3 + $0x220] sm:$0xff]  ;;  %v626_v20 = vld [vmem:[%s2337_s3 + $0x328] sm:$0xff]  ;;  %v611_v21 = vld [vmem:[%s2337_s3 + $0x2b0] sm:$0xff] }
  0x44   :  { %1383 = vmatprep.subr.bf16.mxu1 %v1382_v30  ;;  %v625_v18 = vld [vmem:[%s2337_s3 + $0x320] sm:$0xff]  ;;  %v612_v22 = vld [vmem:[%s2337_s3 + $0x2b8] sm:$0xff]  ;;  %v595_v30 = vld [vmem:[%s2337_s3 + $0x230] sm:$0xff] }
  0x45   :  { %1369 = vmatpush3.bf16.msra.mxu0 %v1368_v5  ;;  %v592_v5 = vld [vmem:[%s2337_s3 + $0x218] sm:$0xff]  ;;  %v1424_v28 = vpack.c.bf16 %v626_v20, %v625_v18  ;;  %v1394_v29 = vpack.c.bf16 %v612_v22, %v611_v21  ;;  %v627_v32 = vld [vmem:[%s2337_s3 + $0x330] sm:$0xff]  ;;  %v613_v39 = vld [vmem:[%s2337_s3 + $0x2c0] sm:$0xff] }
  0x46   :  { %1371 = vmatprep.subr.bf16.mxu0 %v1370_v6  ;;  %v623_v6 = vld [vmem:[%s2337_s3 + $0x310] sm:$0xff]  ;;  %v1388_v13 = vpack.c.bf16 %v592_v5, %v591_v4  ;;  %v644_v25 = vld [vmem:[%s2337_s3 + $0x3b8] sm:$0xff]  ;;  %v614_v40 = vld [vmem:[%s2337_s3 + $0x2c8] sm:$0xff] }
  0x47   :  { %v1420_v14 = vpack.c.bf16 %v624_v8, %v623_v6  ;;  %v596_v31 = vld [vmem:[%s2337_s3 + $0x238] sm:$0xff]  ;;  %v597_v48 = vld [vmem:[%s2337_s3 + $0x240] sm:$0xff]  ;;  %v598_v49 = vld [vmem:[%s2337_s3 + $0x248] sm:$0xff] }
  0x48   :  { %v628_v34 = vld [vmem:[%s2337_s3 + $0x338] sm:$0xff]  ;;  %v629_v50 = vld [vmem:[%s2337_s3 + $0x340] sm:$0xff]  ;;  %v630_v54 = vld [vmem:[%s2337_s3 + $0x348] sm:$0xff] }
  0x49   :  { %1373 = vmatpush3.bf16.msra.mxu0 %v1372_v9  ;;  %v609_v9 = vld [vmem:[%s2337_s3 + $0x2a0] sm:$0xff]  ;;  %v615_v55 = vld [vmem:[%s2337_s3 + $0x2d0] sm:$0xff]  ;;  %v616_v56 = vld [vmem:[%s2337_s3 + $0x2d8] sm:$0xff] }
  0x4a   :  { %1375 = vmatprep.subr.bf16.mxu0 %v1374_v12  ;;  %v642_v12 = vld [vmem:[%s2337_s3 + $0x3a8] sm:$0xff]  ;;  %v647_v59 = vld [vmem:[%s2337_s3 + $0x3d0] sm:$0xff]  ;;  %v600_v4 = vld [vmem:[%s2337_s3 + $0x258] sm:$0xff] }
  0x4b   :  { %v1422_v19 = vpack.c.bf16 %v642_v12, %v641_v11  ;;  %v631_v5 = vld [vmem:[%s2337_s3 + $0x350] sm:$0xff]  ;;  %v632_v8 = vld [vmem:[%s2337_s3 + $0x358] sm:$0xff]  ;;  %v124_v11 = vsub.s32 4, %v2000_v35  ;;  %v649_v12 = vld [vmem:[%s2337_s3 + $0x3e0] sm:$0xff] }
  0x4c   :  { %v633_v20 = vld [vmem:[%s2337_s3 + $0x360] sm:$0xff]  ;;  %v634_v21 = vld [vmem:[%s2337_s3 + $0x368] sm:$0xff] }
  0x4d   :  { %1377 = vmatpush3.bf16.msra.mxu0 %v1376_v15  ;;  %v1390_v15 = vpack.c.bf16 %v610_v10, %v609_v9  ;;  %v617_v9 = vld [vmem:[%s2337_s3 + $0x2e0] sm:$0xff]  ;;  %v618_v10 = vld [vmem:[%s2337_s3 + $0x2e8] sm:$0xff] }
  0x4e   :  { %1379 = vmatprep.subr.bf16.mxu0 %v1378_v24  ;;  %v643_v24 = vld [vmem:[%s2337_s3 + $0x3b0] sm:$0xff]  ;;  %v1406_v18 = vpack.c.bf16 %v618_v10, %v617_v9  ;;  %v660_v9 = vld [vmem:[%s2337_s3 + $0x438] sm:$0xff]  ;;  %v677_v10 = vld [vmem:[%s2337_s3 + $0x4c0] sm:$0xff] }
  0x51   :  { %1381 = vmatpush3.bf16.msra.mxu0 %v1380_v27  ;;  %v1392_v27 = vpack.c.bf16 %v594_v17, %v593_v16  ;;  %v132_v16 = vsub.s32 6, %v2000_v35  ;;  %v1436_v17 = vpack.c.bf16 %v632_v8, %v631_v5  ;;  %v654_v35 = vld [vmem:[%s2337_s3 + $0x408] sm:$0xff]  ;;  %v676_v5 = vld [vmem:[%s2337_s3 + $0x4b8] sm:$0xff]  ;;  %v659_v8 = vld [vmem:[%s2337_s3 + $0x430] sm:$0xff] }
  0x52   :  { %1415 = vmatprep.subr.bf16.mxu0 %v1414_v33  ;;  %v1426_v33 = vpack.c.bf16 %v644_v25, %v643_v24  ;;  %v620_v24 = vld [vmem:[%s2337_s3 + $0x2f8] sm:$0xff]  ;;  %v103_v25 = vld [vmem:[%s2336_s2 + $0x8] sm:$0x3] }
  0xe7   :  { %v226_v45 = vpop.f32.mrb[0].mxu0 }
  0xe8   :  { %v227_v63 = vadd.f32 %v226_v45, %v109_v41  ;;  %v228_v46 = vpop.f32.mrb[1].mxu0  ;;  %v297_v47 = vpop.f32.mrb[0].mxu1  ;;  %v129_v41 = vrot.slane %v2006_v37, %v128_v23  ;;  %v1396_v45 = vpack.c.bf16 %v596_v31, %v595_v30  ;;  %v619_v23 = vld [vmem:[%s2337_s3 + $0x2f0] sm:$0xff]  ;;  %v133_v30 = vrot.slane %v2006_v37, %v132_v16 }
  0xe9   :  { %v229_v51 = vadd.f32 %v228_v46, %v113_v42  ;;  %v298_v52 = vadd.f32 %v297_v47, %v117_v43  ;;  %v299_v53 = vpop.f32.mrb[1].mxu1  ;;  %v645_v42 = vld [vmem:[%s2337_s3 + $0x3c0] sm:$0xff]  ;;  %v646_v43 = vld [vmem:[%s2337_s3 + $0x3c8] sm:$0xff]  ;;  %v1428_v46 = vpack.c.bf16 %v628_v34, %v627_v32  ;;  %v1398_v47 = vpack.c.bf16 %v614_v40, %v613_v39  ;;  %v604_v34 = vld [vmem:[%s2337_s3 + $0x278] sm:$0xff] }
  0xea   :  { %v300_v57 = vadd.f32 %v299_v53, %v121_v44  ;;  %v515_v0 = vmax.f32 %v227_v63, 0.0  ;;  %v137_v44 = vrot.slane %v2006_v37, %v136_v26  ;;  %v1430_v53 = vpack.c.bf16 %v646_v43, %v645_v42  ;;  %v635_v39 = vld [vmem:[%s2337_s3 + $0x370] sm:$0xff]  ;;  %v669_v42 = vld [vmem:[%s2337_s3 + $0x480] sm:$0xff]  ;;  %v670_v43 = vld [vmem:[%s2337_s3 + $0x488] sm:$0xff] }
  0xeb   :  { %v516_v60 = vmax.f32 %v229_v51, 0.0  ;;  %v517_v61 = vmax.f32 %v298_v52, 0.0  ;;  %v125_v26 = vrot.slane %v2006_v37, %v124_v11  ;;  %v1440_v31 = vpack.c.bf16 %v634_v21, %v633_v20  ;;  %v678_v11 = vld [vmem:[%s2337_s3 + $0x4c8] sm:$0xff]  ;;  %v679_v16 = vld [vmem:[%s2337_s3 + $0x4d0] sm:$0xff]  ;;  %v664_v21 = vld [vmem:[%s2337_s3 + $0x458] sm:$0xff] }
  0xec   :  { %v518_v1 = vmax.f32 %v300_v57, 0.0  ;;  %v1410_v32 = vpack.c.bf16 %v620_v24, %v619_v23  ;;  %v141_v40 = vrot.slane %v103_v25, %v108_v36  ;;  %v663_v20 = vld [vmem:[%s2337_s3 + $0x450] sm:$0xff]  ;;  %v682_v23 = vld [vmem:[%s2337_s3 + $0x4e8] sm:$0xff] }
  0xed   :  { %756 = vmatprep.mubr.f32.mxu1 %v516_v60  ;;  %v648_v60 = vld [vmem:[%s2337_s3 + $0x3d8] sm:$0xff]  ;;  %v1468_v24 = vpack.c.bf16 %v664_v21, %v663_v20 }
  0xee   :  { %757 = vmatmul.mubr.f32.vlgmr.msra.gmra.mrb[4].mxu1 %v515_v0  ;;  %826 = vmatprep.mubr.f32.mxu0 %v518_v1  ;;  %v1432_v1 = vpack.c.bf16 %v630_v54, %v629_v50  ;;  %v653_v50 = vld [vmem:[%s2337_s3 + $0x400] sm:$0xff] }
  0xef   :  { %1385 = vmatpush3.bf16.msra.mxu1 %v1384_v62  ;;  %827 = vmatmul.mubr.f32.vlgmr.msra.gmra.mrb[6].mxu0 %v517_v61  ;;  %v1400_v62 = vpack.c.bf16 %v598_v49, %v597_v48  ;;  %v1446_v49 = vpack.c.bf16 %v670_v43, %v669_v42 }
  0xf0   :  { %1417 = vmatpush3.bf16.msra.mxu0 %v1416_v2  ;;  %1387 = vmatprep.subr.bf16.mxu1 %v1386_v3  ;;  %v1402_v2 = vpack.c.bf16 %v616_v56, %v615_v55  ;;  %v599_v3 = vld [vmem:[%s2337_s3 + $0x250] sm:$0xff]  ;;  %v1448_v56 = vpack.c.bf16 %v654_v35, %v653_v50 }
  0xf1   :  { %1419 = vmatprep.subr.bf16.mxu0 %v1418_v7  ;;  %v1434_v7 = vpack.c.bf16 %v648_v60, %v647_v59  ;;  %v656_v59 = vld [vmem:[%s2337_s3 + $0x418] sm:$0xff] }
  0xf3   :  { %1389 = vmatpush3.bf16.msra.mxu1 %v1388_v13  ;;  %v650_v13 = vld [vmem:[%s2337_s3 + $0x3e8] sm:$0xff] }
  0xf4   :  { %1421 = vmatpush3.bf16.msra.mxu0 %v1420_v14  ;;  %1391 = vmatprep.subr.bf16.mxu1 %v1390_v15  ;;  %v1404_v14 = vpack.c.bf16 %v600_v4, %v599_v3  ;;  %v601_v15 = vld [vmem:[%s2337_s3 + $0x260] sm:$0xff]  ;;  %v1438_v22 = vpack.c.bf16 %v650_v13, %v649_v12  ;;  %v658_v3 = vld [vmem:[%s2337_s3 + $0x428] sm:$0xff]  ;;  %v675_v4 = vld [vmem:[%s2337_s3 + $0x4b0] sm:$0xff]  ;;  %v1460_v12 = vpack.c.bf16 %v660_v9, %v659_v8 }
  0xf5   :  { %1423 = vmatprep.subr.bf16.mxu0 %v1422_v19  ;;  %v602_v19 = vld [vmem:[%s2337_s3 + $0x268] sm:$0xff]  ;;  %v1462_v13 = vpack.c.bf16 %v678_v11, %v677_v10 }
  0xf7   :  { %1393 = vmatpush3.bf16.msra.mxu1 %v1392_v27  ;;  %v2119_v63 = vpop.f32.mrb[2].mxu0  ;;  %v651_v27 = vld [vmem:[%s2337_s3 + $0x3f0] sm:$0xff] }
  0xf8   :  { %1425 = vmatpush3.bf16.msra.mxu0 %v1424_v28  ;;  %1395 = vmatprep.subr.bf16.mxu1 %v1394_v29  ;;  %v370_v51 = vpop.f32.mrb[3].mxu0  ;;  %v2130_v52 = vpop.f32.mrb[2].mxu1  ;;  %v652_v28 = vld [vmem:[%s2337_s3 + $0x3f8] sm:$0xff]  ;;  %v1408_v29 = vpack.c.bf16 %v602_v19, %v601_v15  ;;  %v662_v15 = vld [vmem:[%s2337_s3 + $0x448] sm:$0xff] }
  0xf9   :  { %1427 = vmatprep.subr.bf16.mxu0 %v1426_v33  ;;  %v371_v57 = vadd.f32 %v370_v51, %v129_v41  ;;  %v441_v58 = vpop.f32.mrb[3].mxu1  ;;  %v603_v33 = vld [vmem:[%s2337_s3 + $0x270] sm:$0xff]  ;;  %v1442_v37 = vpack.c.bf16 %v652_v28, %v651_v27  ;;  %v636_v41 = vld [vmem:[%s2337_s3 + $0x378] sm:$0xff]  ;;  %v440_v36 = vadd.f32 %v2130_v52, %v133_v30  ;;  %v666_v27 = vld [vmem:[%s2337_s3 + $0x468] sm:$0xff] }
  0xfa   :  { %v442_v61 = vadd.f32 %v441_v58, %v137_v44  ;;  %v145_v44 = vrot.slane %v103_v25, %v112_v38  ;;  %v1444_v48 = vpack.c.bf16 %v636_v41, %v635_v39  ;;  %v671_v51 = vld [vmem:[%s2337_s3 + $0x490] sm:$0xff]  ;;  %v672_v52 = vld [vmem:[%s2337_s3 + $0x498] sm:$0xff] }
  0xfb   :  { %1397 = vmatpush3.bf16.msra.mxu1 %v1396_v45  ;;  %v520_v0 = vmax.f32 %v371_v57, 0.0  ;;  %v369_v45 = vadd.f32 %v2119_v63, %v125_v26  ;;  %v521_v55 = vmax.f32 %v440_v36, 0.0  ;;  %v1450_v57 = vpack.c.bf16 %v672_v52, %v671_v51  ;;  %v655_v58 = vld [vmem:[%s2337_s3 + $0x410] sm:$0xff]  ;;  %v665_v26 = vld [vmem:[%s2337_s3 + $0x460] sm:$0xff] }
  0xfc   :  { %1429 = vmatpush3.bf16.msra.mxu0 %v1428_v46  ;;  %1399 = vmatprep.subr.bf16.mxu1 %v1398_v47  ;;  %v522_v6 = vmax.f32 %v442_v61, 0.0  ;;  %v1412_v46 = vpack.c.bf16 %v604_v34, %v603_v33  ;;  %v673_v61 = vld [vmem:[%s2337_s3 + $0x4a0] sm:$0xff]  ;;  %v683_v28 = vld [vmem:[%s2337_s3 + $0x4f0] sm:$0xff]  ;;  %v1472_v30 = vpack.c.bf16 %v666_v27, %v665_v26  ;;  %v668_v33 = vld [vmem:[%s2337_s3 + $0x478] sm:$0xff] }
  0xfd   :  { %1431 = vmatprep.subr.bf16.mxu0 %v1430_v53  ;;  %896 = vmatprep.mubr.f32.mxu1 %v520_v0  ;;  %v519_v54 = vmax.f32 %v369_v45, 0.0  ;;  %v1452_v0 = vpack.c.bf16 %v656_v59, %v655_v58 }
  0xfe   :  { %966 = vmatprep.mubr.f32.mxu0 %v522_v6 }
  0xff   :  { %1401 = vmatpush3.bf16.msra.mxu1 %v1400_v62  ;;  %v674_v62 = vld [vmem:[%s2337_s3 + $0x4a8] sm:$0xff] }
 0x100   :  { %1433 = vmatpush3.bf16.msra.mxu0 %v1432_v1  ;;  %1403 = vmatprep.subr.bf16.mxu1 %v1402_v2  ;;  %v1454_v1 = vpack.c.bf16 %v674_v62, %v673_v61  ;;  %v657_v2 = vld [vmem:[%s2337_s3 + $0x420] sm:$0xff] }
 0x101   :  { %1435 = vmatprep.subr.bf16.mxu0 %v1434_v7  ;;  %v1456_v6 = vpack.c.bf16 %v658_v3, %v657_v2  ;;  %v1458_v7 = vpack.c.bf16 %v676_v5, %v675_v4 }
 0x103   :  { %1405 = vmatpush3.bf16.msra.mxu1 %v1404_v14  ;;  %v661_v14 = vld [vmem:[%s2337_s3 + $0x440] sm:$0xff] }
 0x104   :  { %1437 = vmatpush3.bf16.msra.mxu0 %v1436_v17  ;;  %1407 = vmatprep.subr.bf16.mxu1 %v1406_v18  ;;  %v680_v17 = vld [vmem:[%s2337_s3 + $0x4d8] sm:$0xff]  ;;  %v1464_v18 = vpack.c.bf16 %v662_v15, %v661_v14 }
 0x105   :  { %1439 = vmatprep.subr.bf16.mxu0 %v1438_v22  ;;  %v1466_v19 = vpack.c.bf16 %v680_v17, %v679_v16  ;;  %v681_v22 = vld [vmem:[%s2337_s3 + $0x4e0] sm:$0xff] }
 0x106   :  { %v1470_v25 = vpack.c.bf16 %v682_v23, %v681_v22 }
 0x107   :  { %1409 = vmatpush3.bf16.msra.mxu1 %v1408_v29  ;;  %v510_v47 = vpop.f32.mrb[4].mxu0  ;;  %v684_v29 = vld [vmem:[%s2337_s3 + $0x4f8] sm:$0xff] }
 0x108   :  { %1441 = vmatpush3.bf16.msra.mxu0 %v1440_v31  ;;  %1411 = vmatprep.subr.bf16.mxu1 %v1410_v32  ;;  %v2232_v38 = vadd.f32 %v510_v47, %v141_v40  ;;  %v512_v63 = vpop.f32.mrb[5].mxu0  ;;  %v1474_v31 = vpack.c.bf16 %v684_v29, %v683_v28  ;;  %v667_v32 = vld [vmem:[%s2337_s3 + $0x470] sm:$0xff]  ;;  %s1505_s3 = smov [#allocation2]  }
 0x109   :  { %1443 = vmatprep.subr.bf16.mxu0 %v1442_v37  ;;  %v513_v53 = vadd.f32 %v512_v63, %v145_v44  ;;  %v1476_v34 = vpack.c.bf16 %v668_v33, %v667_v32  ;;  %v1062_v37 = vld [vmem:[%s2338_s4] ss:$0 sm:$0xff]  ;;  %s1049_s27 = sshll.u32 %s1505_s3, 4  ;;  %s1050_s27 = int_to_ptr.vmem [resolvable:$true] %s1049_s27 }
 0x10a   :  { %v523_v39 = vmax.f32 %v2232_v38, 0.0  ;;  %s1480_s4 = scalar_lea.vmem %s1050_s27, 128  ;;  %p1485_p1 = scmp.lt.s32.totalorder %s1050_s27, %s1050_s27 }
 0x10b   :  { %1413 = vmatpush3.bf16.msra.mxu1 %v1412_v46  ;;  %v524_v60 = vmax.f32 %v513_v53, 0.0  ;;  %p1481_p0 = scmp.ne.s32.totalorder %s1050_s27, %s1480_s4  ;;  %p1486_p2 = scmp.lt.s32.totalorder %s1480_s4, %s1480_s4 }
 0x10c   :  { %1445 = vmatpush3.bf16.msra.mxu0 %v1444_v48  ;;  %1447 = vmatprep.subr.bf16.mxu1 %v1446_v49 }
 0x10d   :  { %p1487_p3 = por %p1486_p2, %p1485_p1 }
 0x10e   :  { %897 = vmatmul.mubr.f32.vlgmr.msra.gmra.mrb[6].mxu1 %v519_v54 }
 0x10f   :  { %1449 = vmatpush3.bf16.msra.mxu1 %v1448_v56  ;;  %967 = vmatmul.mubr.f32.vlgmr.msra.gmra.mrb[8].mxu0 %v521_v55  ;;  %p1488_p4 = pnand %p1487_p3, %p1481_p0 }
 0x110   :  { %1451 = vmatprep.subr.bf16.mxu1 %v1450_v57  ;;  %1036 = vmatprep.mubr.f32.mxu1 %v524_v60 }
 0x113   :  { %1453 = vmatpush3.bf16.msra.mxu1 %v1452_v0 }
 0x114   :  { %1455 = vmatprep.subr.bf16.mxu1 %v1454_v1 }
 0x117   :  { %1457 = vmatpush3.bf16.msra.mxu1 %v1456_v6 }
 0x118   :  { %1459 = vmatprep.subr.bf16.mxu1 %v1458_v7 }
 0x11b   :  { %1461 = vmatpush3.bf16.msra.mxu1 %v1460_v12 }
 0x11c   :  { %1463 = vmatprep.subr.bf16.mxu1 %v1462_v13 }
 0x11f   :  { %1465 = vmatpush3.bf16.msra.mxu1 %v1464_v18 }
 0x120   :  { %1467 = vmatprep.subr.bf16.mxu1 %v1466_v19 }
 0x123   :  { %1469 = vmatpush3.bf16.msra.mxu1 %v1468_v24 }
 0x124   :  { %1471 = vmatprep.subr.bf16.mxu1 %v1470_v25 }
 0x127   :  { %1473 = vmatpush3.bf16.msra.mxu1 %v1472_v30 }
 0x128   :  { %1475 = vmatprep.subr.bf16.mxu1 %v1474_v31 }
 0x12b   :  { %1477 = vmatpush3.bf16.msra.mxu1 %v1476_v34 }
 0x12e   :  { %1037 = vmatmul.mubr.f32.vlgmr.msra.gmra.mrb[8].mxu1 %v523_v39 }
 0x1c1   :  { %v1095_v40 = vpop.f32.mrb[4].mxu1 }
 0x1c2   :  { %v1096_v41 = vpop.f32.mrb[5].mxu1  ;;  %v1130_v42 = vpop.f32.mrb[6].mxu0 }
 0x1c3   :  { %v1097_v43 = vadd.f32 %v1096_v41, %v1095_v40  ;;  %v1131_v44 = vpop.f32.mrb[7].mxu0 }
 0x1c4   :  { %v1132_v45 = vadd.f32 %v1131_v44, %v1130_v42 }
 0x1c5   :  { %v759_v36 = vadd.f32 %v1097_v43, %v1062_v37 }
 0x1c7   :  { %v829_v46 = vadd.f32 %v1132_v45, %v759_v36 }
 0x1e1   :  { %v1165_v47 = vpop.f32.mrb[6].mxu1 }
 0x1e2   :  { %v1166_v48 = vpop.f32.mrb[7].mxu1  ;;  %v1200_v49 = vpop.f32.mrb[8].mxu0 }
 0x1e3   :  { %v1167_v50 = vadd.f32 %v1166_v48, %v1165_v47  ;;  %v1201_v35 = vpop.f32.mrb[9].mxu0 }
 0x1e4   :  { %v1202_v63 = vadd.f32 %v1201_v35, %v1200_v49 }
 0x1e5   :  { %v899_v38 = vadd.f32 %v1167_v50, %v829_v46 }
 0x1e7   :  { %v969_v51 = vadd.f32 %v1202_v63, %v899_v38 }
 0x201   :  { %v1235_v52 = vpop.f32.mrb[8].mxu1 }
 0x202   :  { %v1236_v53 = vpop.f32.mrb[9].mxu1 }
 0x203   :  { %v1237_v54 = vadd.f32 %v1236_v53, %v1235_v52 }
 0x205   :  { %v1039_v55 = vadd.f32 %v1237_v54, %v969_v51 }
 0x207   :  { %1042 = vst [vmem:[#allocation2] sm:$0xff] %v1039_v55 }
 0x208   :  { %1491 = shalt.err (!%p1488_p4)
}
 0x209   :  { %s1492_s30 = scalar_lea.hbm %s2339_s5, 128 }
 0x20a   :  { %p1493_p5 = scmp.ne.s32.totalorder %s2339_s5, %s1492_s30  ;;  %p1496_p6 = scmp.lt.u32.totalorder %s1492_s30, %s2339_s5 }
 0x20c   :  { %p1498_p7 = pnand %p1496_p6, %p1493_p5 }
 0x20e   :  { %1501 = shalt.err (!%p1498_p7)
}
 0x20f   :  { %1052 = dma.vmem_to_hbm [thread:$0]  %s1050_s27, 128, %s2339_s5, [#allocation3]  }
 0x210   :  { %1502 = dma.done.wait [#allocation3], 128  }
 0x211   :  { %1503 = vsyncadd [#allocation3], 4294967168 }
 0x212   :  { %1056 = vsyncpa [#allocation3], 1 }

</bundles_post_ra>
